<compile_context>
chip_gen: v6e
topology: v6e:2x2x1
jax: 0.10.0
libtpu: 0.0.40
codegen_flags: <defaults>
</compile_context>

<pallas_src>
import numpy as np
import jax
import jax.numpy as jnp
from jax.experimental import pallas as pl
from jax.experimental.pallas import tpu as pltpu


def _residual_linear_kernel(x_ref, w_ref, b_ref, o_ref):
    # x_ref: (TM, D) tile of flattened input rows (native dtype).
    # w_ref: (D, D) weight, resident in VMEM across the whole grid (native dtype).
    # b_ref: (1, D) bias.
    x = x_ref[...]
    # fn(x): Linear over the feature axis -> MXU, native-dtype operands,
    # f32 accumulation.  No per-step casts of x or W (pure VALU waste on a
    # mem-bound kernel).
    y = jnp.dot(x, w_ref[...], preferred_element_type=jnp.float32)
    y = y + b_ref[...]
    # Residual add fused in the same pass (VPU); single cast on store.
    o_ref[...] = (y + x).astype(o_ref.dtype)


def residual_forward(x, W, b, *, block_rows=1024):
    """Residual(Linear):  out = (x @ W + b) + x.

    x: (..., D);  W: (D, D);  b: (D,).  Returns the same shape/dtype as x.
    """
    orig_shape = x.shape
    D = orig_shape[-1]
    assert W.shape == (D, D), (W.shape, D)
    assert b.shape == (D,), (b.shape, D)

    x2 = x.reshape(-1, D)
    M = x2.shape[0]

    itemsize = jnp.dtype(x.dtype).itemsize
    w_itemsize = jnp.dtype(W.dtype).itemsize
    b_itemsize = jnp.dtype(b.dtype).itemsize

    # Sublane packing: f32 -> 8 rows / native tile, bf16 -> 16, int8/fp8 -> 32.
    sub = max(8, 32 // itemsize)

    # Cap the row tile so 2x(x tile) + 2x(out tile) + 2x(W,b) stays well under
    # v5e's 16 MiB scoped-VMEM default (v6e/v7x have >= 32 MiB scoped).
    vmem_budget = 12 * 1024 * 1024
    w_bytes = 2 * (D * D * w_itemsize + D * b_itemsize)       # double-buffered
    row_bytes = 2 * 2 * D * itemsize                          # x + out, double-buffered
    tm_cap = max(sub, (max(vmem_budget - w_bytes, 0) // row_bytes // sub) * sub)

    tm = min(block_rows, tm_cap, pl.cdiv(M, sub) * sub)
    tm = max(sub, (tm // sub) * sub)
    n_blocks = pl.cdiv(M, tm)   # ragged last block is masked by Pallas; no pad copy

    cost = pl.CostEstimate(
        flops=2 * M * D * D,
        transcendentals=0,
        bytes_accessed=2 * M * D * itemsize + D * D * w_itemsize + D * b_itemsize,
    )

    out = pl.pallas_call(
        _residual_linear_kernel,
        out_shape=jax.ShapeDtypeStruct((M, D), x.dtype),
        grid=(n_blocks,),
        in_specs=[
            pl.BlockSpec((tm, D), lambda i: (i, 0)),   # x row tile
            pl.BlockSpec((D, D), lambda i: (0, 0)),    # weight (grid-resident)
            pl.BlockSpec((1, D), lambda i: (0, 0)),    # bias   (grid-resident)
        ],
        out_specs=pl.BlockSpec((tm, D), lambda i: (i, 0)),
        compiler_params=pltpu.CompilerParams(
            dimension_semantics=("parallel",)),        # disjoint row tiles
        cost_estimate=cost,
    )(x2, W, b.reshape(1, D))

    return out.reshape(orig_shape)


def residual_reference(x, W, b):
    """Pure-JAX reference mirroring Residual(Linear).forward (same default precision)."""
    y = jnp.einsum("...d,de->...e", x, W) + b
    return (y + x).astype(x.dtype)


if __name__ == "__main__":
    key = jax.random.PRNGKey(0)

    # Small shapes consistent with a typical Residual(Linear) use:
    # batch=2, seq=9, hidden=128.  M = 18 rows -> not a multiple of the tile,
    # so the ragged-last-block (masked) path is exercised without any pad copy.
    B, S, D = 2, 9, 128
    k_x, k_w, k_b = jax.random.split(key, 3)

    x = jax.random.normal(k_x, (B, S, D), jnp.float32)

    # Deterministic Linear init (xavier-uniform style bound for a (D, D) weight).
    bound = float(np.sqrt(6.0 / (D + D)))
    W = jax.random.uniform(k_w, (D, D), jnp.float32, -bound, bound)
    b = jax.random.uniform(k_b, (D,), jnp.float32, -bound, bound)

    ref = residual_reference(x, W, b)

    # 1) Default large-tile path (single grid step at this demo size).
    out = jax.block_until_ready(residual_forward(x, W, b))
    np.testing.assert_allclose(np.asarray(out), np.asarray(ref),
                               rtol=1e-5, atol=1e-5)

    # 2) Small tile forcing a multi-step grid with a masked ragged last block.
    out_small = jax.block_until_ready(residual_forward(x, W, b, block_rows=8))
    np.testing.assert_allclose(np.asarray(out_small), np.asarray(ref),
                               rtol=1e-5, atol=1e-5)

    print("KERNEL_OK")
</pallas_src>

<mosaic_0001>
module attributes {stable_mosaic.version = 11 : i64} {
  func.func @_residual_linear_kernel(%arg0: i32, %arg1: memref<24x128xf32, #tpu.memory_space<vmem>>, %arg2: memref<128x128xf32, #tpu.memory_space<vmem>>, %arg3: memref<1x128xf32, #tpu.memory_space<vmem>>, %arg4: memref<24x128xf32, #tpu.memory_space<vmem>>) attributes {dimension_semantics = [#tpu.dimension_semantics<parallel>], iteration_bounds = array<i64: 1>, scalar_prefetch = 0 : i64, scratch_operands = 0 : i64, tpu.core_type = #tpu.core_type<tc>, window_params = [{transform_indices = @transform_0, window_bounds = array<i64: 24, 128>}, {pipeline_mode = #tpu.pipeline_mode<synchronous>, transform_indices = @transform_1, window_bounds = array<i64: 128, 128>}, {pipeline_mode = #tpu.pipeline_mode<synchronous>, transform_indices = @transform_2, window_bounds = array<i64: 1, 128>}, {transform_indices = @transform_3, window_bounds = array<i64: 24, 128>}]} {
    %c0 = arith.constant 0 : index
    %c0_0 = arith.constant 0 : index
    %0 = vector.load %arg1[%c0, %c0_0] : memref<24x128xf32, #tpu.memory_space<vmem>>, vector<24x128xf32>
    %c0_1 = arith.constant 0 : index
    %c0_2 = arith.constant 0 : index
    %1 = vector.load %arg2[%c0_1, %c0_2] : memref<128x128xf32, #tpu.memory_space<vmem>>, vector<128x128xf32>
    %cst = arith.constant dense<0.000000e+00> : vector<24x128xf32>
    %2 = tpu.matmul %0, %1, %cst {dimension_numbers = #tpu.dot_dimension_numbers<[1], [0], [0], [1], [0, 0, 1, 1], [], []>} : vector<24x128xf32>, vector<128x128xf32>, vector<24x128xf32> -> vector<24x128xf32>
    %c0_3 = arith.constant 0 : index
    %c0_4 = arith.constant 0 : index
    %3 = vector.load %arg3[%c0_3, %c0_4] : memref<1x128xf32, #tpu.memory_space<vmem>>, vector<1x128xf32>
    %4 = vector.broadcast %3 : vector<1x128xf32> to vector<24x128xf32>
    %5 = arith.addf %2, %4 : vector<24x128xf32>
    %6 = arith.addf %5, %0 : vector<24x128xf32>
    %c0_5 = arith.constant 0 : index
    %c0_6 = arith.constant 0 : index
    %7 = vector.load %arg4[%c0_5, %c0_6] : memref<24x128xf32, #tpu.memory_space<vmem>>, vector<24x128xf32>
    tpu.vector_store %arg4[%c0_5, %c0_6], %6 {strides = array<i32>} : memref<24x128xf32, #tpu.memory_space<vmem>>, vector<24x128xf32>,
    return
  }
  func.func @transform_0(%arg0: i32) -> (i32, i32) {
    %c0_i32 = arith.constant 0 : i32
    %c0_i32_0 = arith.constant 0 : i32
    return %arg0, %c0_i32 : i32, i32
  }
  func.func @transform_1(%arg0: i32) -> (i32, i32) {
    %c0_i32 = arith.constant 0 : i32
    %c0_i32_0 = arith.constant 0 : i32
    %c0_i32_1 = arith.constant 0 : i32
    return %c0_i32, %c0_i32_0 : i32, i32
  }
  func.func @transform_2(%arg0: i32) -> (i32, i32) {
    %c0_i32 = arith.constant 0 : i32
    %c0_i32_0 = arith.constant 0 : i32
    %c0_i32_1 = arith.constant 0 : i32
    return %c0_i32, %c0_i32_0 : i32, i32
  }
  func.func @transform_3(%arg0: i32) -> (i32, i32) {
    %c0_i32 = arith.constant 0 : i32
    %c0_i32_0 = arith.constant 0 : i32
    return %arg0, %c0_i32 : i32, i32
  }
}

</mosaic_0001>

<bundles_post_ra>
// kernel: tpu_custom_call.1
= control target key start
LH: loop header
LB: loop body
LE: loop exit
PB: predicated region body
PF: predicated region fallthrough
CT: control target
= control target key end

     0   :  { %8 = vsyncpa [#allocation3], 0  ;;  %s425_s0 = inlined_call_operand.hbm [shape: f32[18,128], index: 0, kind: input, shape index: {}]   ;;  %s426_s1 = inlined_call_operand.hbm [shape: f32[128,128], index: 1, kind: input, shape index: {}]   ;;  %s427_s2 = inlined_call_operand.vmem [shape: f32[1,128], index: 2, kind: input, shape index: {}]   ;;  %s428_s3 = inlined_call_operand.hbm [shape: f32[18,128], index: 3, kind: output, shape index: {}]  }
   0x1   :  { %9 = vsyncpa [#allocation6], 0 }
   0x2   :  { %10 = vsyncpa [#allocation4], 0  ;;  %s339_s12 = smov [#allocation2]  }
   0x3   :  { %s16_s13 = sshll.u32 %s339_s12, 4  ;;  %s17_s13 = int_to_ptr.vmem [resolvable:$true] %s16_s13 }
   0x4   :  { %s281_s14 = scalar_lea.vmem %s17_s13, 384  ;;  %p286_p1 = scmp.lt.s32.totalorder %s17_s13, %s17_s13 }
   0x5   :  { %p282_p0 = scmp.ne.s32.totalorder %s17_s13, %s281_s14  ;;  %p287_p2 = scmp.lt.s32.totalorder %s281_s14, %s281_s14 }
   0x7   :  { %p288_p3 = por %p287_p2, %p286_p1 }
   0x9   :  { %p289_p4 = pnand %p288_p3, %p282_p0 }
   0xb   :  { %292 = shalt.err (!%p289_p4)
}
   0xc   :  { %s340_s15 = smov 128   ;;  %s341_s16 = smov 8  }
   0xd   :  { %22 = dma.hbm_to_vmem [thread:$0]  %s425_s0, 384, %s17_s13, [#allocation3], %s340_s15, %s340_s15, %s341_s16  }
   0xe   :  { %s342_s19 = smov [#allocation5]  }
   0xf   :  { %s28_s20 = sshll.u32 %s342_s19, 4  ;;  %s29_s20 = int_to_ptr.vmem [resolvable:$true] %s28_s20 }
  0x10   :  { %s301_s21 = scalar_lea.vmem %s29_s20, 2048  ;;  %p306_p6 = scmp.lt.s32.totalorder %s29_s20, %s29_s20 }
  0x11   :  { %p302_p5 = scmp.ne.s32.totalorder %s29_s20, %s301_s21  ;;  %p307_p7 = scmp.lt.s32.totalorder %s301_s21, %s301_s21 }
  0x13   :  { %p308_p8 = por %p307_p7, %p306_p6 }
  0x15   :  { %p309_p9 = pnand %p308_p8, %p302_p5 }
  0x17   :  { %312 = shalt.err (!%p309_p9)
}
  0x18   :  { %34 = dma.hbm_to_vmem [thread:$0]  %s426_s1, 2048, %s29_s20, [#allocation6], %s340_s15, %s340_s15, %s341_s16  }
  0x19   :  { %333 = dma.done.wait [#allocation3], 384  }
  0x1a   :  { %334 = vsyncadd [#allocation3], 4294966912 }
  0x1b   :  { %335 = dma.done.wait [#allocation6], 2048  }
  0x1c   :  { %336 = vsyncadd [#allocation6], 4294965248  ;;  %v343_v0 = vmov 0.0   ;;  %vm344_vm0 = vmmov 0   ;;  %v61_v1 = vld [vmem:[#allocation5 + $0x78] sm:$0xff]  ;;  %v60_v2 = vld [vmem:[#allocation5 + $0x70] sm:$0xff] }
  0x1d   :  { %234 = vmatprep.subr.mxu1 %v343_v0  ;;  %193 = vmatprep.subr.mxu0 %v343_v0  ;;  %v59_v3 = vld [vmem:[#allocation5 + $0x68] sm:$0xff]  ;;  %v58_v4 = vld [vmem:[#allocation5 + $0x60] sm:$0xff]  ;;  %v57_v5 = vld [vmem:[#allocation5 + $0x58] sm:$0xff]  ;;  %s345_s24 = smov [#allocation7]  }
  0x1e   :  { %228 = vmatprep.mubr.msk.f32.mxu1 %vm344_vm0, %v343_v0  ;;  %225 = vmatprep.mubr.msk.f32.mxu0 %vm344_vm0, %v343_v0  ;;  %v56_v6 = vld [vmem:[#allocation5 + $0x50] sm:$0xff]  ;;  %v55_v7 = vld [vmem:[#allocation5 + $0x48] sm:$0xff]  ;;  %v54_v8 = vld [vmem:[#allocation5 + $0x40] sm:$0xff]  ;;  %s160_s25 = sshll.u32 %s345_s24, 4  ;;  %s161_s25 = int_to_ptr.vmem [resolvable:$true] %s160_s25 }
  0x1f   :  { %250 = vmatpush3.msra.mxu1 %v61_v1  ;;  %194 = vmatpush3.msra.mxu0 %v61_v1  ;;  %v53_v9 = vld [vmem:[#allocation5 + $0x38] sm:$0xff]  ;;  %v52_v10 = vld [vmem:[#allocation5 + $0x30] sm:$0xff]  ;;  %v51_v11 = vld [vmem:[#allocation5 + $0x28] sm:$0xff]  ;;  %s313_s26 = scalar_lea.vmem %s161_s25, 384  ;;  %p318_p11 = scmp.lt.s32.totalorder %s161_s25, %s161_s25 }
  0x20   :  { %235 = vmatprep.subr.mxu1 %v343_v0  ;;  %195 = vmatprep.subr.mxu0 %v343_v0  ;;  %v50_v12 = vld [vmem:[#allocation5 + $0x20] sm:$0xff]  ;;  %v49_v13 = vld [vmem:[#allocation5 + $0x18] sm:$0xff]  ;;  %v48_v14 = vld [vmem:[#allocation5 + $0x10] sm:$0xff]  ;;  %p314_p10 = scmp.ne.s32.totalorder %s161_s25, %s313_s26  ;;  %p319_p12 = scmp.lt.s32.totalorder %s313_s26, %s313_s26 }
  0x21   :  { %251 = vmatpush3.msra.mxu1 %v60_v2  ;;  %196 = vmatpush3.msra.mxu0 %v60_v2  ;;  %v47_v15 = vld [vmem:[#allocation5 + $0x8] sm:$0xff]  ;;  %v46_v16 = vld [vmem:[#allocation5] sm:$0xff]  ;;  %v44_v17 = vld [vmem:[#allocation2 + $0x8] sm:$0xff] }
  0x22   :  { %236 = vmatprep.subr.mxu1 %v343_v0  ;;  %197 = vmatprep.subr.mxu0 %v343_v0  ;;  %v43_v18 = vld [vmem:[#allocation2] sm:$0xff]  ;;  %v45_v19 = vld [vmem:[#allocation2 + $0x10] sm:$0xff]  ;;  %p320_p13 = por %p319_p12, %p318_p11 }
  0x23   :  { %252 = vmatpush3.msra.mxu1 %v59_v3  ;;  %198 = vmatpush3.msra.mxu0 %v59_v3  ;;  %v173_v20 = vld [vmem:[%s427_s2] ss:$0 sm:$0xff] }
  0x24   :  { %237 = vmatprep.subr.mxu1 %v343_v0  ;;  %199 = vmatprep.subr.mxu0 %v343_v0  ;;  %p321_p0 = pnand %p320_p13, %p314_p10 }
  0x25   :  { %253 = vmatpush3.msra.mxu1 %v58_v4  ;;  %200 = vmatpush3.msra.mxu0 %v58_v4 }
  0x26   :  { %238 = vmatprep.subr.mxu1 %v343_v0  ;;  %201 = vmatprep.subr.mxu0 %v343_v0 }
  0x27   :  { %254 = vmatpush3.msra.mxu1 %v57_v5  ;;  %202 = vmatpush3.msra.mxu0 %v57_v5 }
  0x28   :  { %239 = vmatprep.subr.mxu1 %v343_v0  ;;  %203 = vmatprep.subr.mxu0 %v343_v0 }
  0x29   :  { %255 = vmatpush3.msra.mxu1 %v56_v6  ;;  %204 = vmatpush3.msra.mxu0 %v56_v6 }
  0x2a   :  { %240 = vmatprep.subr.mxu1 %v343_v0  ;;  %205 = vmatprep.subr.mxu0 %v343_v0 }
  0x2b   :  { %256 = vmatpush3.msra.mxu1 %v55_v7  ;;  %206 = vmatpush3.msra.mxu0 %v55_v7 }
  0x2c   :  { %241 = vmatprep.subr.mxu1 %v343_v0  ;;  %207 = vmatprep.subr.mxu0 %v343_v0 }
  0x2d   :  { %257 = vmatpush3.msra.mxu1 %v54_v8  ;;  %208 = vmatpush3.msra.mxu0 %v54_v8 }
  0x2e   :  { %242 = vmatprep.subr.mxu1 %v343_v0  ;;  %209 = vmatprep.subr.mxu0 %v343_v0 }
  0x2f   :  { %258 = vmatpush3.msra.mxu1 %v53_v9  ;;  %210 = vmatpush3.msra.mxu0 %v53_v9 }
  0x30   :  { %243 = vmatprep.subr.mxu1 %v343_v0  ;;  %211 = vmatprep.subr.mxu0 %v343_v0 }
  0x31   :  { %259 = vmatpush3.msra.mxu1 %v52_v10  ;;  %212 = vmatpush3.msra.mxu0 %v52_v10 }
  0x32   :  { %244 = vmatprep.subr.mxu1 %v343_v0  ;;  %213 = vmatprep.subr.mxu0 %v343_v0 }
  0x33   :  { %260 = vmatpush3.msra.mxu1 %v51_v11  ;;  %214 = vmatpush3.msra.mxu0 %v51_v11 }
  0x34   :  { %245 = vmatprep.subr.mxu1 %v343_v0  ;;  %215 = vmatprep.subr.mxu0 %v343_v0 }
  0x35   :  { %261 = vmatpush3.msra.mxu1 %v50_v12  ;;  %216 = vmatpush3.msra.mxu0 %v50_v12 }
  0x36   :  { %246 = vmatprep.subr.mxu1 %v343_v0  ;;  %217 = vmatprep.subr.mxu0 %v343_v0 }
  0x37   :  { %262 = vmatpush3.msra.mxu1 %v49_v13  ;;  %218 = vmatpush3.msra.mxu0 %v49_v13 }
  0x38   :  { %247 = vmatprep.subr.mxu1 %v343_v0  ;;  %219 = vmatprep.subr.mxu0 %v343_v0 }
  0x39   :  { %263 = vmatpush3.msra.mxu1 %v48_v14  ;;  %220 = vmatpush3.msra.mxu0 %v48_v14 }
  0x3a   :  { %248 = vmatprep.subr.mxu1 %v343_v0  ;;  %221 = vmatprep.subr.mxu0 %v343_v0 }
  0x3b   :  { %264 = vmatpush3.msra.mxu1 %v47_v15  ;;  %222 = vmatpush3.msra.mxu0 %v47_v15 }
  0x3c   :  { %249 = vmatprep.subr.mxu1 %v343_v0  ;;  %223 = vmatprep.subr.mxu0 %v343_v0 }
  0x3d   :  { %265 = vmatpush3.msra.mxu1 %v46_v16  ;;  %224 = vmatpush3.msra.mxu0 %v46_v16 }
  0x3e   :  { %229 = vmatmul.mubr.f32.vlgmr.msra.gmra.mxu1 %v44_v17  ;;  %226 = vmatmul.mubr.f32.vlgmr.msra.gmra.mxu0 %v43_v18 }
  0x3f   :  { %231 = vmatprep.mubr.msk.f32.mxu1 %vm344_vm0, %v343_v0 }
  0x42   :  { %232 = vmatmul.mubr.f32.gmra.mxu1 %v45_v19 }
  0xfe   :  { %v140_v21 = vpop.f32.mrf.mxu1  ;;  %v135_v22 = vpop.f32.mrf.mxu0 }
  0xff   :  { %v141_v23 = vadd.f32 %v173_v20, %v140_v21  ;;  %v136_v24 = vadd.f32 %v173_v20, %v135_v22 }
 0x100   :  { %v230_v25 = vpop.f32.mrf.mxu1  ;;  %v227_v26 = vpop.f32.mrf.mxu0 }
 0x101   :  { %v150_v27 = vadd.f32 %v141_v23, %v44_v17  ;;  %v149_v28 = vadd.f32 %v136_v24, %v43_v18 }
 0x102   :  { %v145_v29 = vpop.f32.mrf.mxu1 }
 0x103   :  { %153 = vst [vmem:[#allocation7 + $0x8] sm:$0xff] %v150_v27  ;;  %152 = vst [vmem:[#allocation7] sm:$0xff] %v149_v28  ;;  %v146_v30 = vadd.f32 %v173_v20, %v145_v29 }
 0x104   :  { %v233_v31 = vpop.f32.mrf.mxu1 }
 0x105   :  { %v151_v32 = vadd.f32 %v146_v30, %v45_v19 }
 0x107   :  { %154 = vst [vmem:[#allocation7 + $0x10] sm:$0xff] %v151_v32 }
 0x108   :  { %324 = shalt.err (!%p321_p0)
}
 0x109   :  { %166 = dma.vmem_to_hbm [thread:$0]  %s161_s25, 384, %s428_s3, [#allocation4], %s340_s15, %s340_s15, %s341_s16  }
 0x10a   :  { %337 = dma.done.wait [#allocation4], 384  }
 0x10b   :  { %338 = vsyncadd [#allocation4], 4294966912 }
 0x10c   :  { %170 = vsyncpa [#allocation3], 1 }
 0x10d   :  { %171 = vsyncpa [#allocation6], 1 }
 0x10e   :  { %172 = vsyncpa [#allocation4], 1 }

</bundles_post_ra>
